<compile_context>
chip_gen: v7x
topology: tpu7x:2x2x1
jax: 0.10.0
libtpu: 0.0.40
codegen_flags: <defaults>
</compile_context>

<pallas_src>
import functools
from typing import List

import jax
import jax.numpy as jnp
from jax.experimental import pallas as pl
from jax.experimental.pallas import tpu as pltpu

LN_EPS = 1e-5
_LANE = 128
_SUBLANE = 8


def _round_up(x: int, m: int) -> int:
    return ((x + m - 1) // m) * m


# ---------------------------------------------------------------------------
# Kernel: whole MLP stack on one batch tile.
# refs = (x_ref, [wT_ref, b_ref, gamma_ref, beta_ref] * L, o_ref)
# ---------------------------------------------------------------------------
def _fused_mlp_kernel(*refs, layer_meta, compute_dtype):
    x_ref = refs[0]
    o_ref = refs[-1]
    param_refs = refs[1:-1]

    x = x_ref[...].astype(jnp.float32)
    for li, (out_f, apply_relu) in enumerate(layer_meta):
        wT_ref, b_ref, g_ref, be_ref = param_refs[4 * li: 4 * li + 4]

        # MXU matmul; weight is already pre-transposed to [in_pad, out_pad] so no
        # in-kernel transpose is needed. Accumulate in f32.
        y = jnp.dot(x.astype(compute_dtype), wT_ref[...],
                    preferred_element_type=jnp.float32)
        y = y + b_ref[...]

        # LayerNorm over the REAL feature width (padded output columns are exactly
        # zero: zero weight columns + zero bias), stats in f32.
        inv_n = 1.0 / float(out_f)
        mean = jnp.sum(y, axis=-1, keepdims=True) * inv_n
        mean_sq = jnp.sum(y * y, axis=-1, keepdims=True) * inv_n
        var = jnp.maximum(mean_sq - mean * mean, 0.0)
        y = (y - mean) * jax.lax.rsqrt(var + LN_EPS)
        # gamma is zero-padded, so padded columns return to exact zero here.
        y = y * g_ref[...] + be_ref[...]
        if apply_relu:
            y = jnp.maximum(y, 0.0)
        # Dropout: identity (eval mode).
        x = y

    o_ref[...] = x.astype(o_ref.dtype)


# ---------------------------------------------------------------------------
# Wrapper: batch-tiled grid, un-gridded (resident) weights, padded features.
# ---------------------------------------------------------------------------
def fused_mlp_forward(x, padded_layers, *, compute_dtype=jnp.float32,
                      vmem_budget_bytes=24 << 20):
    """x: [N, in_f].  padded_layers: list of
       (wT_pad[in_pad,out_pad], b_pad[1,out_pad], g_pad[1,out_pad], beta_pad[1,out_pad],
        in_pad, out_pad, out_f_real, apply_relu)."""
    n, in_f = x.shape
    in_pad0 = padded_layers[0][4]
    out_pad_last = padded_layers[-1][5]
    out_f_last = padded_layers[-1][6]
    itemsize = 4

    # --- batch tile: largest multiple of 8 that fits the VMEM budget -------------
    # double-buffered x/out tiles + single-buffered intermediate activations
    inter_width = sum(p[5] for p in padded_layers)
    per_row = (2 * (in_pad0 + out_pad_last) + 2 * inter_width) * itemsize
    tile_n = max(_SUBLANE, min(1024, vmem_budget_bytes // max(per_row, 1)))
    tile_n = (tile_n // _SUBLANE) * _SUBLANE
    tile_n = min(tile_n, _round_up(n, _SUBLANE))
    n_pad = _round_up(n, tile_n)

    # --- pad the input batch/features (padded rows/cols are sliced off at the end)
    x_pad = jnp.zeros((n_pad, in_pad0), jnp.float32).at[:n, :in_f].set(
        x.astype(jnp.float32))

    layer_meta = tuple((p[6], p[7]) for p in padded_layers)

    inputs = [x_pad]
    in_specs = [pl.BlockSpec((tile_n, in_pad0), lambda i: (i, 0))]
    for (wT, bp, gp, bep, in_p, out_p, _, _) in padded_layers:
        inputs += [wT.astype(compute_dtype), bp, gp, bep]
        in_specs += [
            pl.BlockSpec((in_p, out_p), lambda i: (0, 0)),   # weight: resident
            pl.BlockSpec((1, out_p), lambda i: (0, 0)),      # bias
            pl.BlockSpec((1, out_p), lambda i: (0, 0)),      # LN gamma
            pl.BlockSpec((1, out_p), lambda i: (0, 0)),      # LN beta
        ]
    out_spec = pl.BlockSpec((tile_n, out_pad_last), lambda i: (i, 0))

    # --- explicit (conservative) VMEM limit: params + pipelined tiles + headroom --
    param_bytes = sum(int(a.size) * a.dtype.itemsize for a in inputs[1:])
    act_bytes = 2 * tile_n * (in_pad0 + out_pad_last) * itemsize
    inter_bytes = 2 * tile_n * inter_width * itemsize
    est = 2 * param_bytes + act_bytes + inter_bytes
    vmem_limit = int(min(max(2 * est, 16 << 20), 32 << 20))  # safe on v5e/v6e/v7x

    kernel = functools.partial(_fused_mlp_kernel, layer_meta=layer_meta,
                               compute_dtype=compute_dtype)
    out_padded = pl.pallas_call(
        kernel,
        out_shape=jax.ShapeDtypeStruct((n_pad, out_pad_last), jnp.float32),
        grid=(n_pad // tile_n,),
        in_specs=in_specs,
        out_specs=out_spec,
        compiler_params=pltpu.CompilerParams(
            dimension_semantics=("parallel",),
            vmem_limit_bytes=vmem_limit),
    )(*inputs)
    return out_padded[:n, :out_f_last]


def init_linear_params(key, in_f, out_f, dtype=jnp.float32):
    """Deterministic init mimicking PyTorch nn.Linear defaults (uniform ±1/sqrt(in))."""
    kw, kb = jax.random.split(key)
    bound = 1.0 / (in_f ** 0.5)
    w = jax.random.uniform(kw, (out_f, in_f), dtype, minval=-bound, maxval=bound)
    b = jax.random.uniform(kb, (out_f,), dtype, minval=-bound, maxval=bound)
    return w, b


class FullyConnectedNNPallas:
    """JAX/Pallas re-implementation of FullyConnectedNN's forward pass."""

    def __init__(self, input_size: int, layers_sizes: List[int],
                 hidden_size: int, dropout_prob: float, key):
        self.dropout_prob = dropout_prob  # identity at inference
        self.hidden_size = hidden_size

        # (in_f, out_f, apply_relu) per block, matching the PyTorch module.
        if layers_sizes == [0]:
            dims = [(input_size, hidden_size, True)]
        else:
            dims = [(input_size, layers_sizes[0], True)]
            for i in range(len(layers_sizes) - 1):
                dims.append((layers_sizes[i], layers_sizes[i + 1], True))
            dims.append((layers_sizes[-1], hidden_size, False))  # no ReLU/Dropout

        # Raw (PyTorch-layout) params for the pure-JAX reference.
        self.layers = []
        for (in_f, out_f, relu) in dims:
            key, sub = jax.random.split(key)
            w, b = init_linear_params(sub, in_f, out_f)
            gamma = jnp.ones((out_f,), jnp.float32)   # LayerNorm weight
            beta = jnp.zeros((out_f,), jnp.float32)   # LayerNorm bias
            self.layers.append((w, b, gamma, beta, relu))

        # Pre-transposed + lane-padded params for the fused kernel (done once).
        self.padded = []
        for (w, b, gamma, beta, relu) in self.layers:
            out_f, in_f = w.shape
            in_pad = _round_up(in_f, _LANE)
            out_pad = _round_up(out_f, _LANE)
            wT = jnp.zeros((in_pad, out_pad), jnp.float32).at[:in_f, :out_f].set(w.T)
            bp = jnp.zeros((1, out_pad), jnp.float32).at[0, :out_f].set(b)
            gp = jnp.zeros((1, out_pad), jnp.float32).at[0, :out_f].set(gamma)
            bep = jnp.zeros((1, out_pad), jnp.float32).at[0, :out_f].set(beta)
            self.padded.append((wT, bp, gp, bep, in_pad, out_pad, out_f, relu))

    def __call__(self, x, *, compute_dtype=jnp.float32):
        return fused_mlp_forward(x, self.padded, compute_dtype=compute_dtype)


def reference_forward(model: FullyConnectedNNPallas, x):
    """Pure-JAX f32 reference (PyTorch semantics) for correctness check."""
    for (w, b, gamma, beta, relu) in model.layers:
        y = x @ w.T + b
        mean = jnp.mean(y, axis=-1, keepdims=True)
        var = jnp.mean((y - mean) ** 2, axis=-1, keepdims=True)
        y = (y - mean) / jnp.sqrt(var + LN_EPS) * gamma + beta
        if relu:
            y = jnp.maximum(y, 0.0)
        x = y
    return x


if __name__ == "__main__":
    key = jax.random.PRNGKey(0)
    key, xkey, pkey = jax.random.split(key, 3)

    # Small, module-consistent shapes.
    batch = 8
    input_size = 16
    layers_sizes = [32, 24]
    hidden_size = 32
    dropout_prob = 0.1

    model = FullyConnectedNNPallas(input_size, layers_sizes, hidden_size,
                                   dropout_prob, pkey)
    x = jax.random.normal(xkey, (batch, input_size), jnp.float32)

    ref = reference_forward(model, x)

    # f32 path (exactness check).
    out = jax.block_until_ready(model(x))
    assert out.shape == (batch, hidden_size), out.shape
    assert jnp.allclose(out, ref, atol=1e-4, rtol=1e-4), "f32 mismatch vs JAX reference"

    # bf16 MXU path (v5e/v6e/v7x MXU-friendly); LayerNorm stats stay in f32.
    out_bf16 = jax.block_until_ready(model(x, compute_dtype=jnp.bfloat16))
    assert out_bf16.shape == (batch, hidden_size), out_bf16.shape
    assert jnp.allclose(out_bf16, ref, atol=1e-1, rtol=1e-1), "bf16 mismatch vs reference"

    print("KERNEL_OK")
</pallas_src>

<mosaic_0001>
module attributes {stable_mosaic.version = 11 : i64} {
  func.func @_fused_mlp_kernel(%arg0: i32, %arg1: memref<8x128xf32, #tpu.memory_space<vmem>>, %arg2: memref<128x128xf32, #tpu.memory_space<vmem>>, %arg3: memref<1x128xf32, #tpu.memory_space<vmem>>, %arg4: memref<1x128xf32, #tpu.memory_space<vmem>>, %arg5: memref<1x128xf32, #tpu.memory_space<vmem>>, %arg6: memref<128x128xf32, #tpu.memory_space<vmem>>, %arg7: memref<1x128xf32, #tpu.memory_space<vmem>>, %arg8: memref<1x128xf32, #tpu.memory_space<vmem>>, %arg9: memref<1x128xf32, #tpu.memory_space<vmem>>, %arg10: memref<128x128xf32, #tpu.memory_space<vmem>>, %arg11: memref<1x128xf32, #tpu.memory_space<vmem>>, %arg12: memref<1x128xf32, #tpu.memory_space<vmem>>, %arg13: memref<1x128xf32, #tpu.memory_space<vmem>>, %arg14: memref<8x128xf32, #tpu.memory_space<vmem>>) attributes {dimension_semantics = [#tpu.dimension_semantics<parallel>], iteration_bounds = array<i64: 1>, scalar_prefetch = 0 : i64, scratch_operands = 0 : i64, tpu.core_type = #tpu.core_type<tc>, window_params = [{transform_indices = @transform_0, window_bounds = array<i64: 8, 128>}, {pipeline_mode = #tpu.pipeline_mode<synchronous>, transform_indices = @transform_1, window_bounds = array<i64: 128, 128>}, {pipeline_mode = #tpu.pipeline_mode<synchronous>, transform_indices = @transform_2, window_bounds = array<i64: 1, 128>}, {pipeline_mode = #tpu.pipeline_mode<synchronous>, transform_indices = @transform_3, window_bounds = array<i64: 1, 128>}, {pipeline_mode = #tpu.pipeline_mode<synchronous>, transform_indices = @transform_4, window_bounds = array<i64: 1, 128>}, {pipeline_mode = #tpu.pipeline_mode<synchronous>, transform_indices = @transform_5, window_bounds = array<i64: 128, 128>}, {pipeline_mode = #tpu.pipeline_mode<synchronous>, transform_indices = @transform_6, window_bounds = array<i64: 1, 128>}, {pipeline_mode = #tpu.pipeline_mode<synchronous>, transform_indices = @transform_7, window_bounds = array<i64: 1, 128>}, {pipeline_mode = #tpu.pipeline_mode<synchronous>, transform_indices = @transform_8, window_bounds = array<i64: 1, 128>}, {pipeline_mode = #tpu.pipeline_mode<synchronous>, transform_indices = @transform_9, window_bounds = array<i64: 128, 128>}, {pipeline_mode = #tpu.pipeline_mode<synchronous>, transform_indices = @transform_10, window_bounds = array<i64: 1, 128>}, {pipeline_mode = #tpu.pipeline_mode<synchronous>, transform_indices = @transform_11, window_bounds = array<i64: 1, 128>}, {pipeline_mode = #tpu.pipeline_mode<synchronous>, transform_indices = @transform_12, window_bounds = array<i64: 1, 128>}, {transform_indices = @transform_13, window_bounds = array<i64: 8, 128>}]} {
    %c0 = arith.constant 0 : index
    %c0_0 = arith.constant 0 : index
    %0 = vector.load %arg1[%c0, %c0_0] : memref<8x128xf32, #tpu.memory_space<vmem>>, vector<8x128xf32>
    %c0_1 = arith.constant 0 : index
    %c0_2 = arith.constant 0 : index
    %1 = vector.load %arg2[%c0_1, %c0_2] : memref<128x128xf32, #tpu.memory_space<vmem>>, vector<128x128xf32>
    %cst = arith.constant dense<0.000000e+00> : vector<8x128xf32>
    %2 = tpu.matmul %0, %1, %cst {dimension_numbers = #tpu.dot_dimension_numbers<[1], [0], [0], [1], [0, 0, 1, 1], [], []>} : vector<8x128xf32>, vector<128x128xf32>, vector<8x128xf32> -> vector<8x128xf32>
    %c0_3 = arith.constant 0 : index
    %c0_4 = arith.constant 0 : index
    %3 = vector.load %arg3[%c0_3, %c0_4] : memref<1x128xf32, #tpu.memory_space<vmem>>, vector<1x128xf32>
    %4 = vector.broadcast %3 : vector<1x128xf32> to vector<8x128xf32>
    %5 = arith.addf %2, %4 : vector<8x128xf32>
    %cst_5 = arith.constant dense<0.000000e+00> : vector<8xf32>
    %6 = vector.multi_reduction <add>, %5, %cst_5 [1] : vector<8x128xf32> to vector<8xf32>
    %7 = vector.shape_cast %6 : vector<8xf32> to vector<8x1xf32>
    %cst_6 = arith.constant 3.125000e-02 : f32
    %8 = vector.broadcast %cst_6 : f32 to vector<8x1xf32>
    %9 = arith.mulf %7, %8 : vector<8x1xf32>
    %10 = arith.mulf %5, %5 : vector<8x128xf32>
    %cst_7 = arith.constant dense<0.000000e+00> : vector<8xf32>
    %11 = vector.multi_reduction <add>, %10, %cst_7 [1] : vector<8x128xf32> to vector<8xf32>
    %12 = vector.shape_cast %11 : vector<8xf32> to vector<8x1xf32>
    %cst_8 = arith.constant 3.125000e-02 : f32
    %13 = vector.broadcast %cst_8 : f32 to vector<8x1xf32>
    %14 = arith.mulf %12, %13 : vector<8x1xf32>
    %15 = arith.mulf %9, %9 : vector<8x1xf32>
    %16 = arith.subf %14, %15 : vector<8x1xf32>
    %cst_9 = arith.constant 0.000000e+00 : f32
    %17 = vector.broadcast %cst_9 : f32 to vector<8x1xf32>
    %18 = arith.maximumf %16, %17 : vector<8x1xf32>
    %19 = vector.broadcast %9 : vector<8x1xf32> to vector<8x128xf32>
    %20 = arith.subf %5, %19 : vector<8x128xf32>
    %cst_10 = arith.constant 9.99999974E-6 : f32
    %21 = vector.broadcast %cst_10 : f32 to vector<8x1xf32>
    %22 = arith.addf %18, %21 : vector<8x1xf32>
    %23 = math.rsqrt %22 : vector<8x1xf32>
    %24 = vector.broadcast %23 : vector<8x1xf32> to vector<8x128xf32>
    %25 = arith.mulf %20, %24 : vector<8x128xf32>
    %c0_11 = arith.constant 0 : index
    %c0_12 = arith.constant 0 : index
    %26 = vector.load %arg4[%c0_11, %c0_12] : memref<1x128xf32, #tpu.memory_space<vmem>>, vector<1x128xf32>
    %27 = vector.broadcast %26 : vector<1x128xf32> to vector<8x128xf32>
    %28 = arith.mulf %25, %27 : vector<8x128xf32>
    %c0_13 = arith.constant 0 : index
    %c0_14 = arith.constant 0 : index
    %29 = vector.load %arg5[%c0_13, %c0_14] : memref<1x128xf32, #tpu.memory_space<vmem>>, vector<1x128xf32>
    %30 = vector.broadcast %29 : vector<1x128xf32> to vector<8x128xf32>
    %31 = arith.addf %28, %30 : vector<8x128xf32>
    %cst_15 = arith.constant 0.000000e+00 : f32
    %32 = vector.broadcast %cst_15 : f32 to vector<8x128xf32>
    %33 = arith.maximumf %31, %32 : vector<8x128xf32>
    %c0_16 = arith.constant 0 : index
    %c0_17 = arith.constant 0 : index
    %34 = vector.load %arg6[%c0_16, %c0_17] : memref<128x128xf32, #tpu.memory_space<vmem>>, vector<128x128xf32>
    %cst_18 = arith.constant dense<0.000000e+00> : vector<8x128xf32>
    %35 = tpu.matmul %33, %34, %cst_18 {dimension_numbers = #tpu.dot_dimension_numbers<[1], [0], [0], [1], [0, 0, 1, 1], [], []>} : vector<8x128xf32>, vector<128x128xf32>, vector<8x128xf32> -> vector<8x128xf32>
    %c0_19 = arith.constant 0 : index
    %c0_20 = arith.constant 0 : index
    %36 = vector.load %arg7[%c0_19, %c0_20] : memref<1x128xf32, #tpu.memory_space<vmem>>, vector<1x128xf32>
    %37 = vector.broadcast %36 : vector<1x128xf32> to vector<8x128xf32>
    %38 = arith.addf %35, %37 : vector<8x128xf32>
    %cst_21 = arith.constant dense<0.000000e+00> : vector<8xf32>
    %39 = vector.multi_reduction <add>, %38, %cst_21 [1] : vector<8x128xf32> to vector<8xf32>
    %40 = vector.shape_cast %39 : vector<8xf32> to vector<8x1xf32>
    %cst_22 = arith.constant 0.0416666679 : f32
    %41 = vector.broadcast %cst_22 : f32 to vector<8x1xf32>
    %42 = arith.mulf %40, %41 : vector<8x1xf32>
    %43 = arith.mulf %38, %38 : vector<8x128xf32>
    %cst_23 = arith.constant dense<0.000000e+00> : vector<8xf32>
    %44 = vector.multi_reduction <add>, %43, %cst_23 [1] : vector<8x128xf32> to vector<8xf32>
    %45 = vector.shape_cast %44 : vector<8xf32> to vector<8x1xf32>
    %cst_24 = arith.constant 0.0416666679 : f32
    %46 = vector.broadcast %cst_24 : f32 to vector<8x1xf32>
    %47 = arith.mulf %45, %46 : vector<8x1xf32>
    %48 = arith.mulf %42, %42 : vector<8x1xf32>
    %49 = arith.subf %47, %48 : vector<8x1xf32>
    %cst_25 = arith.constant 0.000000e+00 : f32
    %50 = vector.broadcast %cst_25 : f32 to vector<8x1xf32>
    %51 = arith.maximumf %49, %50 : vector<8x1xf32>
    %52 = vector.broadcast %42 : vector<8x1xf32> to vector<8x128xf32>
    %53 = arith.subf %38, %52 : vector<8x128xf32>
    %cst_26 = arith.constant 9.99999974E-6 : f32
    %54 = vector.broadcast %cst_26 : f32 to vector<8x1xf32>
    %55 = arith.addf %51, %54 : vector<8x1xf32>
    %56 = math.rsqrt %55 : vector<8x1xf32>
    %57 = vector.broadcast %56 : vector<8x1xf32> to vector<8x128xf32>
    %58 = arith.mulf %53, %57 : vector<8x128xf32>
    %c0_27 = arith.constant 0 : index
    %c0_28 = arith.constant 0 : index
    %59 = vector.load %arg8[%c0_27, %c0_28] : memref<1x128xf32, #tpu.memory_space<vmem>>, vector<1x128xf32>
    %60 = vector.broadcast %59 : vector<1x128xf32> to vector<8x128xf32>
    %61 = arith.mulf %58, %60 : vector<8x128xf32>
    %c0_29 = arith.constant 0 : index
    %c0_30 = arith.constant 0 : index
    %62 = vector.load %arg9[%c0_29, %c0_30] : memref<1x128xf32, #tpu.memory_space<vmem>>, vector<1x128xf32>
    %63 = vector.broadcast %62 : vector<1x128xf32> to vector<8x128xf32>
    %64 = arith.addf %61, %63 : vector<8x128xf32>
    %cst_31 = arith.constant 0.000000e+00 : f32
    %65 = vector.broadcast %cst_31 : f32 to vector<8x128xf32>
    %66 = arith.maximumf %64, %65 : vector<8x128xf32>
    %c0_32 = arith.constant 0 : index
    %c0_33 = arith.constant 0 : index
    %67 = vector.load %arg10[%c0_32, %c0_33] : memref<128x128xf32, #tpu.memory_space<vmem>>, vector<128x128xf32>
    %cst_34 = arith.constant dense<0.000000e+00> : vector<8x128xf32>
    %68 = tpu.matmul %66, %67, %cst_34 {dimension_numbers = #tpu.dot_dimension_numbers<[1], [0], [0], [1], [0, 0, 1, 1], [], []>} : vector<8x128xf32>, vector<128x128xf32>, vector<8x128xf32> -> vector<8x128xf32>
    %c0_35 = arith.constant 0 : index
    %c0_36 = arith.constant 0 : index
    %69 = vector.load %arg11[%c0_35, %c0_36] : memref<1x128xf32, #tpu.memory_space<vmem>>, vector<1x128xf32>
    %70 = vector.broadcast %69 : vector<1x128xf32> to vector<8x128xf32>
    %71 = arith.addf %68, %70 : vector<8x128xf32>
    %cst_37 = arith.constant dense<0.000000e+00> : vector<8xf32>
    %72 = vector.multi_reduction <add>, %71, %cst_37 [1] : vector<8x128xf32> to vector<8xf32>
    %73 = vector.shape_cast %72 : vector<8xf32> to vector<8x1xf32>
    %cst_38 = arith.constant 3.125000e-02 : f32
    %74 = vector.broadcast %cst_38 : f32 to vector<8x1xf32>
    %75 = arith.mulf %73, %74 : vector<8x1xf32>
    %76 = arith.mulf %71, %71 : vector<8x128xf32>
    %cst_39 = arith.constant dense<0.000000e+00> : vector<8xf32>
    %77 = vector.multi_reduction <add>, %76, %cst_39 [1] : vector<8x128xf32> to vector<8xf32>
    %78 = vector.shape_cast %77 : vector<8xf32> to vector<8x1xf32>
    %cst_40 = arith.constant 3.125000e-02 : f32
    %79 = vector.broadcast %cst_40 : f32 to vector<8x1xf32>
    %80 = arith.mulf %78, %79 : vector<8x1xf32>
    %81 = arith.mulf %75, %75 : vector<8x1xf32>
    %82 = arith.subf %80, %81 : vector<8x1xf32>
    %cst_41 = arith.constant 0.000000e+00 : f32
    %83 = vector.broadcast %cst_41 : f32 to vector<8x1xf32>
    %84 = arith.maximumf %82, %83 : vector<8x1xf32>
    %85 = vector.broadcast %75 : vector<8x1xf32> to vector<8x128xf32>
    %86 = arith.subf %71, %85 : vector<8x128xf32>
    %cst_42 = arith.constant 9.99999974E-6 : f32
    %87 = vector.broadcast %cst_42 : f32 to vector<8x1xf32>
    %88 = arith.addf %84, %87 : vector<8x1xf32>
    %89 = math.rsqrt %88 : vector<8x1xf32>
    %90 = vector.broadcast %89 : vector<8x1xf32> to vector<8x128xf32>
    %91 = arith.mulf %86, %90 : vector<8x128xf32>
    %c0_43 = arith.constant 0 : index
    %c0_44 = arith.constant 0 : index
    %92 = vector.load %arg12[%c0_43, %c0_44] : memref<1x128xf32, #tpu.memory_space<vmem>>, vector<1x128xf32>
    %93 = vector.broadcast %92 : vector<1x128xf32> to vector<8x128xf32>
    %94 = arith.mulf %91, %93 : vector<8x128xf32>
    %c0_45 = arith.constant 0 : index
    %c0_46 = arith.constant 0 : index
    %95 = vector.load %arg13[%c0_45, %c0_46] : memref<1x128xf32, #tpu.memory_space<vmem>>, vector<1x128xf32>
    %96 = vector.broadcast %95 : vector<1x128xf32> to vector<8x128xf32>
    %97 = arith.addf %94, %96 : vector<8x128xf32>
    %c0_47 = arith.constant 0 : index
    %c0_48 = arith.constant 0 : index
    %98 = vector.load %arg14[%c0_47, %c0_48] : memref<8x128xf32, #tpu.memory_space<vmem>>, vector<8x128xf32>
    tpu.vector_store %arg14[%c0_47, %c0_48], %97 {strides = array<i32>} : memref<8x128xf32, #tpu.memory_space<vmem>>, vector<8x128xf32>,
    return
  }
  func.func @transform_0(%arg0: i32) -> (i32, i32) {
    %c0_i32 = arith.constant 0 : i32
    %c0_i32_0 = arith.constant 0 : i32
    return %arg0, %c0_i32 : i32, i32
  }
  func.func @transform_1(%arg0: i32) -> (i32, i32) {
    %c0_i32 = arith.constant 0 : i32
    %c0_i32_0 = arith.constant 0 : i32
    %c0_i32_1 = arith.constant 0 : i32
    return %c0_i32, %c0_i32_0 : i32, i32
  }
  func.func @transform_2(%arg0: i32) -> (i32, i32) {
    %c0_i32 = arith.constant 0 : i32
    %c0_i32_0 = arith.constant 0 : i32
    %c0_i32_1 = arith.constant 0 : i32
    return %c0_i32, %c0_i32_0 : i32, i32
  }
  func.func @transform_3(%arg0: i32) -> (i32, i32) {
    %c0_i32 = arith.constant 0 : i32
    %c0_i32_0 = arith.constant 0 : i32
    %c0_i32_1 = arith.constant 0 : i32
    return %c0_i32, %c0_i32_0 : i32, i32
  }
  func.func @transform_4(%arg0: i32) -> (i32, i32) {
    %c0_i32 = arith.constant 0 : i32
    %c0_i32_0 = arith.constant 0 : i32
    %c0_i32_1 = arith.constant 0 : i32
    return %c0_i32, %c0_i32_0 : i32, i32
  }
  func.func @transform_5(%arg0: i32) -> (i32, i32) {
    %c0_i32 = arith.constant 0 : i32
    %c0_i32_0 = arith.constant 0 : i32
    %c0_i32_1 = arith.constant 0 : i32
    return %c0_i32, %c0_i32_0 : i32, i32
  }
  func.func @transform_6(%arg0: i32) -> (i32, i32) {
    %c0_i32 = arith.constant 0 : i32
    %c0_i32_0 = arith.constant 0 : i32
    %c0_i32_1 = arith.constant 0 : i32
    return %c0_i32, %c0_i32_0 : i32, i32
  }
  func.func @transform_7(%arg0: i32) -> (i32, i32) {
    %c0_i32 = arith.constant 0 : i32
    %c0_i32_0 = arith.constant 0 : i32
    %c0_i32_1 = arith.constant 0 : i32
    return %c0_i32, %c0_i32_0 : i32, i32
  }
  func.func @transform_8(%arg0: i32) -> (i32, i32) {
    %c0_i32 = arith.constant 0 : i32
    %c0_i32_0 = arith.constant 0 : i32
    %c0_i32_1 = arith.constant 0 : i32
    return %c0_i32, %c0_i32_0 : i32, i32
  }
  func.func @transform_9(%arg0: i32) -> (i32, i32) {
    %c0_i32 = arith.constant 0 : i32
    %c0_i32_0 = arith.constant 0 : i32
    %c0_i32_1 = arith.constant 0 : i32
    return %c0_i32, %c0_i32_0 : i32, i32
  }
  func.func @transform_10(%arg0: i32) -> (i32, i32) {
    %c0_i32 = arith.constant 0 : i32
    %c0_i32_0 = arith.constant 0 : i32
    %c0_i32_1 = arith.constant 0 : i32
    return %c0_i32, %c0_i32_0 : i32, i32
  }
  func.func @transform_11(%arg0: i32) -> (i32, i32) {
    %c0_i32 = arith.constant 0 : i32
    %c0_i32_0 = arith.constant 0 : i32
    %c0_i32_1 = arith.constant 0 : i32
    return %c0_i32, %c0_i32_0 : i32, i32
  }
  func.func @transform_12(%arg0: i32) -> (i32, i32) {
    %c0_i32 = arith.constant 0 : i32
    %c0_i32_0 = arith.constant 0 : i32
    %c0_i32_1 = arith.constant 0 : i32
    return %c0_i32, %c0_i32_0 : i32, i32
  }
  func.func @transform_13(%arg0: i32) -> (i32, i32) {
    %c0_i32 = arith.constant 0 : i32
    %c0_i32_0 = arith.constant 0 : i32
    return %arg0, %c0_i32 : i32, i32
  }
}

</mosaic_0001>

<bundles_post_ra>
// kernel: tpu_custom_call.1
= control target key start
LH: loop header
LB: loop body
LE: loop exit
PB: predicated region body
PF: predicated region fallthrough
CT: control target
= control target key end

     0   :  { %18 = vsyncpa [#allocation3], 0  ;;  %s1062_s0 = inlined_call_operand.hbm [shape: f32[8,128], index: 0, kind: input, shape index: {}]   ;;  %s1063_s1 = inlined_call_operand.hbm [shape: f32[128,128], index: 1, kind: input, shape index: {}]   ;;  %s1064_s2 = inlined_call_operand.vmem [shape: f32[1,128], index: 2, kind: input, shape index: {}]   ;;  %s1065_s3 = inlined_call_operand.vmem [shape: f32[1,128], index: 3, kind: input, shape index: {}]   ;;  %s1066_s4 = inlined_call_operand.vmem [shape: f32[1,128], index: 4, kind: input, shape index: {}]   ;;  %s1067_s5 = inlined_call_operand.hbm [shape: f32[128,128], index: 5, kind: input, shape index: {}]   ;;  %s1068_s6 = inlined_call_operand.vmem [shape: f32[1,128], index: 6, kind: input, shape index: {}]   ;;  %s1069_s7 = inlined_call_operand.vmem [shape: f32[1,128], index: 7, kind: input, shape index: {}]   ;;  %s1070_s8 = inlined_call_operand.vmem [shape: f32[1,128], index: 8, kind: input, shape index: {}]   ;;  %s1071_s9 = inlined_call_operand.hbm [shape: f32[128,128], index: 9, kind: input, shape index: {}]   ;;  %s1072_s10 = inlined_call_operand.vmem [shape: f32[1,128], index: 10, kind: input, shape index: {}]   ;;  %s1073_s11 = inlined_call_operand.vmem [shape: f32[1,128], index: 11, kind: input, shape index: {}]   ;;  %s1074_s12 = inlined_call_operand.vmem [shape: f32[1,128], index: 12, kind: input, shape index: {}]   ;;  %s1075_s13 = inlined_call_operand.hbm [shape: f32[8,128], index: 13, kind: output, shape index: {}]  }
   0x1   :  { %19 = vsyncpa [#allocation6], 0 }
   0x2   :  { %20 = vsyncpa [#allocation9], 0 }
   0x3   :  { %21 = vsyncpa [#allocation4], 0  ;;  %s859_s25 = smov [#allocation5]   ;;  %s741_s29 = scalar_lea.hbm %s1063_s1, 2048 }
   0x4   :  { %s37_s26 = sshll.u32 %s859_s25, 4  ;;  %p742_p0 = scmp.ne.s32.totalorder %s1063_s1, %s741_s29  ;;  %s38_s26 = int_to_ptr.vmem [resolvable:$true] %s37_s26 }
   0x5   :  { %p745_p1 = scmp.lt.u32.totalorder %s741_s29, %s1063_s1 }
   0x7   :  { %p747_p2 = pnand %p745_p1, %p742_p0 }
   0x9   :  { %750 = shalt.err (!%p747_p2)
}
   0xa   :  { %s751_s17 = scalar_lea.vmem %s38_s26, 2048  ;;  %p756_p4 = scmp.lt.s32.totalorder %s38_s26, %s38_s26 }
   0xb   :  { %p752_p3 = scmp.ne.s32.totalorder %s38_s26, %s751_s17  ;;  %p757_p5 = scmp.lt.s32.totalorder %s751_s17, %s751_s17 }
   0xd   :  { %p758_p6 = por %p757_p5, %p756_p4 }
   0xf   :  { %p759_p7 = pnand %p758_p6, %p752_p3 }
  0x11   :  { %762 = shalt.err (!%p759_p7)
}
  0x12   :  { %s860_s18 = smov 128   ;;  %s861_s19 = smov 8  }
  0x13   :  { %43 = dma.hbm_to_vmem [thread:$0]  %s1063_s1, 2048, %s38_s26, [#allocation6], %s860_s18, %s860_s18, %s861_s19  }
  0x14   :  { %s862_s22 = smov [#allocation2]   ;;  %s863_s24 = smov [#allocation7]  }
  0x15   :  { %s28_s23 = sshll.u32 %s862_s22, 4  ;;  %s55_s25 = sshll.u32 %s863_s24, 4  ;;  %s29_s23 = int_to_ptr.vmem [resolvable:$true] %s28_s23  ;;  %s56_s25 = int_to_ptr.vmem [resolvable:$true] %s55_s25 }
  0x16   :  { %s763_s29 = scalar_lea.hbm %s1062_s0, 128 }
  0x17   :  { %p764_p8 = scmp.ne.s32.totalorder %s1062_s0, %s763_s29  ;;  %p767_p9 = scmp.lt.u32.totalorder %s763_s29, %s1062_s0 }
  0x19   :  { %p769_p10 = pnand %p767_p9, %p764_p8 }
  0x1b   :  { %772 = shalt.err (!%p769_p10)
}
  0x1c   :  { %s773_s1 = scalar_lea.vmem %s29_s23, 128  ;;  %p778_p12 = scmp.lt.s32.totalorder %s29_s23, %s29_s23 }
  0x1d   :  { %p774_p11 = scmp.ne.s32.totalorder %s29_s23, %s773_s1  ;;  %p779_p13 = scmp.lt.s32.totalorder %s773_s1, %s773_s1 }
  0x1f   :  { %p780_p0 = por %p779_p13, %p778_p12 }
  0x21   :  { %p781_p1 = pnand %p780_p0, %p774_p11 }
  0x23   :  { %784 = shalt.err (!%p781_p1)
}
  0x24   :  { %31 = dma.hbm_to_vmem [thread:$0]  %s1062_s0, 128, %s29_s23, [#allocation3]  }
  0x25   :  { %s785_s22 = scalar_lea.hbm %s1067_s5, 2048 }
  0x26   :  { %p786_p2 = scmp.ne.s32.totalorder %s1067_s5, %s785_s22  ;;  %p789_p3 = scmp.lt.u32.totalorder %s785_s22, %s1067_s5 }
  0x28   :  { %p791_p4 = pnand %p789_p3, %p786_p2 }
  0x2a   :  { %794 = shalt.err (!%p791_p4)
}
  0x2b   :  { %s795_s30 = scalar_lea.vmem %s56_s25, 2048  ;;  %p800_p6 = scmp.lt.s32.totalorder %s56_s25, %s56_s25 }
  0x2c   :  { %p796_p5 = scmp.ne.s32.totalorder %s56_s25, %s795_s30  ;;  %p801_p7 = scmp.lt.s32.totalorder %s795_s30, %s795_s30 }
  0x2e   :  { %p802_p8 = por %p801_p7, %p800_p6 }
  0x30   :  { %p803_p9 = pnand %p802_p8, %p796_p5 }
  0x32   :  { %806 = shalt.err (!%p803_p9)
}
  0x33   :  { %61 = dma.hbm_to_vmem [thread:$0]  %s1067_s5, 2048, %s56_s25, [#allocation6], %s860_s18, %s860_s18, %s861_s19  }
  0x34   :  { %s864_s14 = smov [#allocation8]   ;;  %s807_s26 = scalar_lea.hbm %s1071_s9, 2048 }
  0x35   :  { %s73_s15 = sshll.u32 %s864_s14, 4  ;;  %p808_p10 = scmp.ne.s32.totalorder %s1071_s9, %s807_s26  ;;  %s74_s15 = int_to_ptr.vmem [resolvable:$true] %s73_s15 }
  0x36   :  { %p811_p11 = scmp.lt.u32.totalorder %s807_s26, %s1071_s9 }
  0x38   :  { %p813_p12 = pnand %p811_p11, %p808_p10 }
  0x3a   :  { %816 = shalt.err (!%p813_p12)
}
  0x3b   :  { %s817_s24 = scalar_lea.vmem %s74_s15, 2048  ;;  %p822_p0 = scmp.lt.s32.totalorder %s74_s15, %s74_s15 }
  0x3c   :  { %p818_p13 = scmp.ne.s32.totalorder %s74_s15, %s817_s24  ;;  %p823_p1 = scmp.lt.s32.totalorder %s817_s24, %s817_s24 }
  0x3e   :  { %p824_p2 = por %p823_p1, %p822_p0 }
  0x40   :  { %p825_p3 = pnand %p824_p2, %p818_p13 }
  0x42   :  { %828 = shalt.err (!%p825_p3)
}
  0x43   :  { %79 = dma.hbm_to_vmem [thread:$0]  %s1071_s9, 2048, %s74_s15, [#allocation9], %s860_s18, %s860_s18, %s861_s19  }
  0x44   :  { %851 = dma.done.wait [#allocation3], 128  }
  0x45   :  { %852 = vsyncadd [#allocation3], 4294967168 }
  0x46   :  { %853 = dma.done.wait [#allocation6], 4096  }
  0x47   :  { %854 = vsyncadd [#allocation6], 4294963200 }
  0x48   :  { %855 = dma.done.wait [#allocation9], 2048  }
  0x49   :  { %856 = vsyncadd [#allocation9], 4294965248  ;;  %v865_v0 = vmov 0.0|0.0   ;;  %vm866_vm0 = vmmov 0   ;;  %v867_v1 = vmov 0.0   ;;  %v99_v2 = vld [vmem:[#allocation5] sm:$0xff] }
  0x4a   :  { %653 = vmatprep.subr.bf16.mxu0 %v865_v0  ;;  %580 = vmatprep.mubr.msk.f32.mxu0 %vm866_vm0, %v867_v1  ;;  %v100_v3 = vld [vmem:[#allocation5 + $0x8] sm:$0xff]  ;;  %v101_v4 = vld [vmem:[#allocation5 + $0x10] sm:$0xff]  ;;  %v102_v6 = vld [vmem:[#allocation5 + $0x18] sm:$0xff]  ;;  %s868_s16 = smov [#allocation10]  }
  0x4b   :  { %677 = vmatprep.subr.bf16.mxu1 %v865_v0  ;;  %615 = vmatprep.mubr.msk.f32.mxu1 %vm866_vm0, %v867_v1  ;;  %v654_v5 = vpack.c.bf16 %v100_v3, %v99_v2  ;;  %v657_v7 = vpack.c.bf16 %v102_v6, %v101_v4  ;;  %v103_v8 = vld [vmem:[#allocation5 + $0x20] sm:$0xff]  ;;  %v104_v9 = vld [vmem:[#allocation5 + $0x28] sm:$0xff]  ;;  %v105_v11 = vld [vmem:[#allocation5 + $0x30] sm:$0xff]  ;;  %s477_s1 = sshll.u32 %s868_s16, 4  ;;  %s478_s1 = int_to_ptr.vmem [resolvable:$true] %s477_s1 }
  0x4c   :  { %v660_v10 = vpack.c.bf16 %v104_v9, %v103_v8  ;;  %v106_v12 = vld [vmem:[#allocation5 + $0x38] sm:$0xff]  ;;  %v107_v14 = vld [vmem:[#allocation5 + $0x40] sm:$0xff]  ;;  %v108_v15 = vld [vmem:[#allocation5 + $0x48] sm:$0xff]  ;;  %s829_s26 = scalar_lea.vmem %s478_s1, 128  ;;  %p834_p5 = scmp.lt.s32.totalorder %s478_s1, %s478_s1 }
  0x4d   :  { %655 = vmatpush3.bf16.msra.mxu0 %v654_v5  ;;  %v663_v13 = vpack.c.bf16 %v106_v12, %v105_v11  ;;  %v666_v16 = vpack.c.bf16 %v108_v15, %v107_v14  ;;  %v109_v17 = vld [vmem:[#allocation5 + $0x50] sm:$0xff]  ;;  %v110_v18 = vld [vmem:[#allocation5 + $0x58] sm:$0xff]  ;;  %v111_v20 = vld [vmem:[#allocation5 + $0x60] sm:$0xff]  ;;  %p830_p4 = scmp.ne.s32.totalorder %s478_s1, %s829_s26  ;;  %p835_p6 = scmp.lt.s32.totalorder %s829_s26, %s829_s26 }
  0x4e   :  { %656 = vmatprep.subr.bf16.mxu0 %v865_v0  ;;  %v669_v19 = vpack.c.bf16 %v110_v18, %v109_v17  ;;  %v112_v21 = vld [vmem:[#allocation5 + $0x68] sm:$0xff]  ;;  %v113_v23 = vld [vmem:[#allocation5 + $0x70] sm:$0xff]  ;;  %v114_v24 = vld [vmem:[#allocation5 + $0x78] sm:$0xff] }
  0x4f   :  { %v672_v22 = vpack.c.bf16 %v112_v21, %v111_v20  ;;  %v675_v25 = vpack.c.bf16 %v114_v24, %v113_v23  ;;  %v98_v26 = vld [vmem:[#allocation2] sm:$0xff]  ;;  %v223_v32 = vld [vmem:[#allocation7] sm:$0xff]  ;;  %v224_v33 = vld [vmem:[#allocation7 + $0x8] sm:$0xff]  ;;  %p836_p7 = por %p835_p6, %p834_p5 }
  0x50   :  { %v488_v27 = vld [vmem:[%s1064_s2] ss:$0 sm:$0xff]  ;;  %v678_v34 = vpack.c.bf16 %v224_v33, %v223_v32  ;;  %v225_v35 = vld [vmem:[#allocation7 + $0x10] sm:$0xff]  ;;  %v227_v38 = vld [vmem:[#allocation7 + $0x20] sm:$0xff] }
  0x51   :  { %658 = vmatpush3.bf16.msra.mxu0 %v657_v7  ;;  %v226_v36 = vld [vmem:[#allocation7 + $0x18] sm:$0xff]  ;;  %v228_v39 = vld [vmem:[#allocation7 + $0x28] sm:$0xff]  ;;  %v229_v41 = vld [vmem:[#allocation7 + $0x30] sm:$0xff]  ;;  %p837_p8 = pnand %p836_p7, %p830_p4 }
  0x52   :  { %659 = vmatprep.subr.bf16.mxu0 %v865_v0  ;;  %679 = vmatpush3.bf16.msra.mxu1 %v678_v34  ;;  %v681_v37 = vpack.c.bf16 %v226_v36, %v225_v35  ;;  %v684_v40 = vpack.c.bf16 %v228_v39, %v227_v38  ;;  %v230_v42 = vld [vmem:[#allocation7 + $0x38] sm:$0xff]  ;;  %v231_v44 = vld [vmem:[#allocation7 + $0x40] sm:$0xff]  ;;  %v232_v45 = vld [vmem:[#allocation7 + $0x48] sm:$0xff] }
  0x53   :  { %680 = vmatprep.subr.bf16.mxu1 %v865_v0  ;;  %v687_v43 = vpack.c.bf16 %v230_v42, %v229_v41  ;;  %v690_v46 = vpack.c.bf16 %v232_v45, %v231_v44  ;;  %v233_v47 = vld [vmem:[#allocation7 + $0x50] sm:$0xff]  ;;  %v234_v48 = vld [vmem:[#allocation7 + $0x58] sm:$0xff]  ;;  %v235_v50 = vld [vmem:[#allocation7 + $0x60] sm:$0xff] }
  0x54   :  { %v693_v49 = vpack.c.bf16 %v234_v48, %v233_v47  ;;  %v236_v51 = vld [vmem:[#allocation7 + $0x68] sm:$0xff]  ;;  %v237_v53 = vld [vmem:[#allocation7 + $0x70] sm:$0xff]  ;;  %v238_v54 = vld [vmem:[#allocation7 + $0x78] sm:$0xff] }
  0x55   :  { %661 = vmatpush3.bf16.msra.mxu0 %v660_v10  ;;  %v696_v52 = vpack.c.bf16 %v236_v51, %v235_v50  ;;  %v699_v55 = vpack.c.bf16 %v238_v54, %v237_v53  ;;  %v489_v3 = vld [vmem:[%s1065_s3] ss:$0 sm:$0xff]  ;;  %v347_v14 = vld [vmem:[#allocation8] sm:$0xff]  ;;  %v348_v15 = vld [vmem:[#allocation8 + $0x8] sm:$0xff] }
  0x56   :  { %662 = vmatprep.subr.bf16.mxu0 %v865_v0  ;;  %682 = vmatpush3.bf16.msra.mxu1 %v681_v37  ;;  %v490_v5 = vld [vmem:[%s1066_s4] ss:$0 sm:$0xff]  ;;  %v349_v17 = vld [vmem:[#allocation8 + $0x10] sm:$0xff]  ;;  %v351_v20 = vld [vmem:[#allocation8 + $0x20] sm:$0xff] }
  0x57   :  { %683 = vmatprep.subr.bf16.mxu1 %v865_v0  ;;  %v491_v9 = vld [vmem:[%s1068_s6] ss:$0 sm:$0xff]  ;;  %v352_v21 = vld [vmem:[#allocation8 + $0x28] sm:$0xff]  ;;  %v353_v23 = vld [vmem:[#allocation8 + $0x30] sm:$0xff] }
  0x58   :  { %v350_v18 = vld [vmem:[#allocation8 + $0x18] sm:$0xff]  ;;  %v359_v32 = vld [vmem:[#allocation8 + $0x60] sm:$0xff]  ;;  %v360_v33 = vld [vmem:[#allocation8 + $0x68] sm:$0xff] }
  0x59   :  { %664 = vmatpush3.bf16.msra.mxu0 %v663_v13  ;;  %v354_v24 = vld [vmem:[#allocation8 + $0x38] sm:$0xff]  ;;  %v720_v34 = vpack.c.bf16 %v360_v33, %v359_v32  ;;  %v361_v35 = vld [vmem:[#allocation8 + $0x70] sm:$0xff] }
  0x5a   :  { %665 = vmatprep.subr.bf16.mxu0 %v865_v0  ;;  %685 = vmatpush3.bf16.msra.mxu1 %v684_v40  ;;  %v362_v36 = vld [vmem:[#allocation8 + $0x78] sm:$0xff] }
  0x5b   :  { %686 = vmatprep.subr.bf16.mxu1 %v865_v0  ;;  %v723_v37 = vpack.c.bf16 %v362_v36, %v361_v35  ;;  %v492_v48 = vld [vmem:[%s1069_s7] ss:$0 sm:$0xff] }
  0x5c   :  { %v494_v53 = vld [vmem:[%s1072_s10] ss:$0 sm:$0xff] }
  0x5d   :  { %667 = vmatpush3.bf16.msra.mxu0 %v666_v16  ;;  %v702_v16 = vpack.c.bf16 %v348_v15, %v347_v14 }
  0x5e   :  { %668 = vmatprep.subr.bf16.mxu0 %v865_v0  ;;  %688 = vmatpush3.bf16.msra.mxu1 %v687_v43 }
  0x5f   :  { %689 = vmatprep.subr.bf16.mxu1 %v865_v0 }
  0x61   :  { %670 = vmatpush3.bf16.msra.mxu0 %v669_v19  ;;  %v705_v19 = vpack.c.bf16 %v350_v18, %v349_v17 }
  0x62   :  { %671 = vmatprep.subr.bf16.mxu0 %v865_v0  ;;  %691 = vmatpush3.bf16.msra.mxu1 %v690_v46 }
  0x63   :  { %692 = vmatprep.subr.bf16.mxu1 %v865_v0 }
  0x65   :  { %673 = vmatpush3.bf16.msra.mxu0 %v672_v22  ;;  %v708_v22 = vpack.c.bf16 %v352_v21, %v351_v20 }
  0x66   :  { %674 = vmatprep.subr.bf16.mxu0 %v865_v0  ;;  %694 = vmatpush3.bf16.msra.mxu1 %v693_v49 }
  0x67   :  { %695 = vmatprep.subr.bf16.mxu1 %v865_v0 }
  0x69   :  { %676 = vmatpush3.bf16.msra.mxu0 %v675_v25  ;;  %v711_v25 = vpack.c.bf16 %v354_v24, %v353_v23 }
  0x6a   :  { %701 = vmatprep.subr.bf16.mxu0 %v865_v0  ;;  %697 = vmatpush3.bf16.msra.mxu1 %v696_v52 }
  0x6b   :  { %698 = vmatprep.subr.bf16.mxu1 %v865_v0 }
  0x6c   :  { %581 = vmatmul.mubr.f32.vlgmr.msra.gmra.mrb[0].mxu0 %v98_v26  ;;  %v355_v26 = vld [vmem:[#allocation8 + $0x40] sm:$0xff] }
  0x6d   :  { %650 = vmatprep.mubr.msk.f32.mxu0 %vm866_vm0, %v867_v1  ;;  %703 = vmatpush3.bf16.msra.mxu0 %v702_v16 }
  0x6e   :  { %700 = vmatpush3.bf16.msra.mxu1 %v699_v55  ;;  %704 = vmatprep.subr.bf16.mxu0 %v865_v0 }
  0x71   :  { %706 = vmatpush3.bf16.msra.mxu0 %v705_v19 }
  0x72   :  { %707 = vmatprep.subr.bf16.mxu0 %v865_v0 }
  0x75   :  { %709 = vmatpush3.bf16.msra.mxu0 %v708_v22 }
  0x76   :  { %710 = vmatprep.subr.bf16.mxu0 %v865_v0 }
  0x79   :  { %712 = vmatpush3.bf16.msra.mxu0 %v711_v25 }
  0x7a   :  { %713 = vmatprep.subr.bf16.mxu0 %v865_v0 }
 0x13f   :  { %v188_v28 = vpop.f32.mrb[0].mxu0 }
 0x140   :  { %v189_v29 = vadd.f32 %v488_v27, %v188_v28  ;;  %v582_v30 = vpop.f32.mrb[1].mxu0  ;;  %v356_v27 = vld [vmem:[#allocation8 + $0x48] sm:$0xff] }
 0x141   :  { %v714_v28 = vpack.c.bf16 %v356_v27, %v355_v26  ;;  %v358_v30 = vld [vmem:[#allocation8 + $0x58] sm:$0xff] }
 0x142   :  { %192 = vadd.xlane.f32.xlu0 %v189_v29  ;;  %v195_v31 = vmul.f32 %v189_v29, %v189_v29 }
 0x143   :  { %715 = vmatpush3.bf16.msra.mxu0 %v714_v28 }
 0x144   :  { %716 = vmatprep.subr.bf16.mxu0 %v865_v0 }
 0x146   :  { %196 = vadd.xlane.f32.xlu0 %v195_v31 }
 0x1cf   :  { %v193_v56 = vpop.xlane.xlu0 %192 }
 0x1d0   :  { %v194_v57 = vmul.f32 0.03125, %v193_v56 }
 0x1d2   :  { %v199_v59 = vmul.f32 %v194_v57, %v194_v57  ;;  %v202_v1 = vsub.f32 %v189_v29, %v194_v57  ;;  %v357_v29 = vld [vmem:[#allocation8 + $0x50] sm:$0xff] }
 0x1d3   :  { %v197_v58 = vpop.xlane.xlu0 %196  ;;  %v717_v31 = vpack.c.bf16 %v358_v30, %v357_v29 }
 0x1d4   :  { %v198_v60 = vmul.f32 0.03125, %v197_v58 }
 0x1d5   :  { %718 = vmatpush3.bf16.msra.mxu0 %v717_v31 }
 0x1d6   :  { %v200_v61 = vsub.f32 %v198_v60, %v199_v59  ;;  %719 = vmatprep.subr.bf16.mxu0 %v865_v0 }
 0x1d8   :  { %v201_v62 = vmax.f32 %v200_v61, 0.0 }
 0x1d9   :  { %721 = vmatpush3.bf16.msra.mxu0 %v720_v34 }
 0x1da   :  { %v203_v63 = vadd.f32 1e-05, %v201_v62  ;;  %722 = vmatprep.subr.bf16.mxu0 %v865_v0  ;;  %v493_v0 = vld [vmem:[%s1070_s8] ss:$0 sm:$0xff] }
 0x1dc   :  { %735 = vrsqrt.f32 %v203_v63 }
 0x1dd   :  { %724 = vmatpush3.bf16.msra.mxu0 %v723_v37 }
 0x1e6   :  { %v736_v2 = vpop.eup %735 }
 0x1e7   :  { %v205_v4 = vmul.f32 %v736_v2, %v202_v1 }
 0x1e9   :  { %v213_v6 = vmul.f32 %v489_v3, %v205_v4 }
 0x1eb   :  { %v221_v7 = vadd.f32 %v490_v5, %v213_v6  ;;  %v495_v5 = vld [vmem:[%s1073_s11] ss:$0 sm:$0xff] }
 0x1ed   :  { %v222_v8 = vmax.f32 %v221_v7, 0.0  ;;  %v496_v7 = vld [vmem:[%s1074_s12] ss:$0 sm:$0xff] }
 0x1ef   :  { %616 = vmatmul.mubr.f32.vlgmr.msra.gmra.mrb[0].mxu1 %v222_v8 }
 0x2c2   :  { %v312_v10 = vpop.f32.mrb[0].mxu1 }
 0x2c3   :  { %v313_v11 = vadd.f32 %v491_v9, %v312_v10  ;;  %v617_v12 = vpop.f32.mrb[1].mxu1 }
 0x2c5   :  { %316 = vadd.xlane.f32.xlu1 %v313_v11  ;;  %v319_v13 = vmul.f32 %v313_v11, %v313_v11 }
 0x2c9   :  { %320 = vadd.xlane.f32.xlu1 %v319_v13 }
 0x352   :  { %v317_v38 = vpop.xlane.xlu1 %316 }
 0x353   :  { %v318_v39 = vmul.f32 0.041666668, %v317_v38 }
 0x355   :  { %v323_v41 = vmul.f32 %v318_v39, %v318_v39  ;;  %v326_v46 = vsub.f32 %v313_v11, %v318_v39 }
 0x356   :  { %v321_v40 = vpop.xlane.xlu1 %320 }
 0x357   :  { %v322_v42 = vmul.f32 0.041666668, %v321_v40 }
 0x359   :  { %v324_v43 = vsub.f32 %v322_v42, %v323_v41 }
 0x35b   :  { %v325_v44 = vmax.f32 %v324_v43, 0.0 }
 0x35d   :  { %v327_v45 = vadd.f32 1e-05, %v325_v44 }
 0x35f   :  { %737 = vrsqrt.f32 %v327_v45 }
 0x369   :  { %v738_v47 = vpop.eup %737 }
 0x36a   :  { %v329_v49 = vmul.f32 %v738_v47, %v326_v46 }
 0x36c   :  { %v337_v50 = vmul.f32 %v492_v48, %v329_v49 }
 0x36e   :  { %v345_v51 = vadd.f32 %v493_v0, %v337_v50 }
 0x370   :  { %v346_v52 = vmax.f32 %v345_v51, 0.0 }
 0x372   :  { %651 = vmatmul.mubr.f32.vlgmr.msra.gmra.mrb[2].mxu0 %v346_v52 }
 0x445   :  { %v436_v54 = vpop.f32.mrb[2].mxu0 }
 0x446   :  { %v437_v55 = vadd.f32 %v494_v53, %v436_v54  ;;  %v652_v56 = vpop.f32.mrb[3].mxu0 }
 0x448   :  { %440 = vadd.xlane.f32.xlu0 %v437_v55  ;;  %v443_v57 = vmul.f32 %v437_v55, %v437_v55 }
 0x44a   :  { %444 = vadd.xlane.f32.xlu1 %v443_v57 }
 0x4d5   :  { %v441_v58 = vpop.xlane.xlu0 %440 }
 0x4d6   :  { %v442_v59 = vmul.f32 0.03125, %v441_v58 }
 0x4d7   :  { %v445_v60 = vpop.xlane.xlu1 %444 }
 0x4d8   :  { %v447_v61 = vmul.f32 %v442_v59, %v442_v59  ;;  %v446_v62 = vmul.f32 0.03125, %v445_v60  ;;  %v450_v3 = vsub.f32 %v437_v55, %v442_v59 }
 0x4da   :  { %v448_v63 = vsub.f32 %v446_v62, %v447_v61 }
 0x4dc   :  { %v449_v1 = vmax.f32 %v448_v63, 0.0 }
 0x4de   :  { %v451_v2 = vadd.f32 1e-05, %v449_v1 }
 0x4e0   :  { %739 = vrsqrt.f32 %v451_v2 }
 0x4ea   :  { %v740_v4 = vpop.eup %739 }
 0x4eb   :  { %v453_v6 = vmul.f32 %v740_v4, %v450_v3 }
 0x4ed   :  { %v461_v8 = vmul.f32 %v495_v5, %v453_v6 }
 0x4ef   :  { %v469_v9 = vadd.f32 %v496_v7, %v461_v8 }
 0x4f1   :  { %470 = vst [vmem:[#allocation10] sm:$0xff] %v469_v9 }
 0x4f2   :  { %840 = shalt.err (!%p837_p8)
}
 0x4f3   :  { %s841_s20 = scalar_lea.hbm %s1075_s13, 128 }
 0x4f4   :  { %p842_p9 = scmp.ne.s32.totalorder %s1075_s13, %s841_s20  ;;  %p845_p10 = scmp.lt.u32.totalorder %s841_s20, %s1075_s13 }
 0x4f6   :  { %p847_p11 = pnand %p845_p10, %p842_p9 }
 0x4f8   :  { %850 = shalt.err (!%p847_p11)
}
 0x4f9   :  { %480 = dma.vmem_to_hbm [thread:$0]  %s478_s1, 128, %s1075_s13, [#allocation4]  }
 0x4fa   :  { %857 = dma.done.wait [#allocation4], 128  }
 0x4fb   :  { %858 = vsyncadd [#allocation4], 4294967168 }
 0x4fc   :  { %484 = vsyncpa [#allocation3], 1 }
 0x4fd   :  { %485 = vsyncpa [#allocation6], 1 }
 0x4fe   :  { %486 = vsyncpa [#allocation9], 1 }
 0x4ff   :  { %487 = vsyncpa [#allocation4], 1 }

</bundles_post_ra>
